<compile_context>
chip_gen: v7x
topology: tpu7x:2x2x1
jax: 0.10.0
libtpu: 0.0.40
codegen_flags: <defaults>
</compile_context>

<pallas_src>
import functools

import numpy as np
import jax
import jax.numpy as jnp
from jax.experimental import pallas as pl
from jax.experimental.pallas import tpu as pltpu


def _round_up(x, m):
    return ((x + m - 1) // m) * m


def _min_sublanes(dtype):
    # Minimum second-to-last tile multiple per dtype: f32 -> 8, bf16 -> 16, int8 -> 32.
    return max(8, 32 // jnp.dtype(dtype).itemsize)


def fuse_mdn_params(params, *, n_mixtures, out_dim, tk=512):
    """Pre-fuse the three Linear heads into one lane-packed weight/bias.

    Column layout (Np = round_up(km + 2*nm, 128), km = n_mixtures*out_dim):
      [0, km)          mean logits (raw affine output)
      [km, km+nm)      alpha logits (softmaxed in-kernel)
      [km+nm, km+2nm)  sigma_inv logits (exp'd in-kernel)
      [km+2nm, Np)     zero padding
    Rows are zero-padded to a multiple of `tk` when in_dim > tk so the kernel
    can tile the contraction dimension.  Call ONCE at init, not per forward.
    """
    w_mean, b_mean, w_alpha, b_alpha, w_sigma, b_sigma = params
    in_dim = w_mean.shape[0]
    km = n_mixtures * out_dim
    nm = n_mixtures
    Np = _round_up(km + 2 * nm, 128)
    K_pad = in_dim if in_dim <= tk else _round_up(in_dim, tk)

    w = jnp.concatenate([w_mean, w_alpha, w_sigma], axis=-1)
    b = jnp.concatenate([b_mean, b_alpha, b_sigma], axis=-1)
    w = jnp.pad(w, ((0, K_pad - in_dim), (0, Np - w.shape[-1])))
    b = jnp.pad(b, ((0, 0), (0, Np - b.shape[-1])))
    return w, b


def _mdn_kernel(x_ref, w_ref, b_ref, out_ref, acc_ref, *, km, nm):
    k = pl.program_id(1)

    @pl.when(k == 0)
    def _init():
        acc_ref[...] = jnp.zeros_like(acc_ref)

    # Fused MXU matmul over the current K tile; f32 accumulation.
    acc_ref[...] += jnp.dot(x_ref[...], w_ref[...],
                            preferred_element_type=jnp.float32)

    @pl.when(k == pl.num_programs(1) - 1)
    def _finalize():
        y = acc_ref[...] + b_ref[...].astype(jnp.float32)   # (tb, Np)
        lane = jax.lax.broadcasted_iota(jnp.int32, y.shape, 1)
        is_mean = lane < km
        is_alpha = (lane >= km) & (lane < km + nm)

        # Softmax restricted to the alpha lane range.
        logits = jnp.where(is_alpha, y, jnp.float32(-1e30))
        m = jnp.max(logits, axis=-1, keepdims=True)
        e = jnp.exp(logits - m)
        denom = jnp.sum(e, axis=-1, keepdims=True)
        alpha = e * pl.reciprocal(denom, approx=True)

        # sigma_inv lanes (and trailing pad lanes, discarded by the wrapper)
        # get exp(); mean lanes pass through raw.
        packed = jnp.where(is_mean, y, jnp.where(is_alpha, alpha, jnp.exp(y)))
        out_ref[...] = packed.astype(out_ref.dtype)


def mixture_density_top(x, w_fused, b_fused, *, n_mixtures, out_dim,
                        tb=1024, tk=512):
    """Forward pass of MixtureDensityTop.

    x: (..., in_dim); w_fused/b_fused from fuse_mdn_params (same tk!).
    Returns (mean (..., n_mix, out_dim), sigma_inv (..., n_mix), alpha (..., n_mix)).
    """
    prev_shape = x.shape[:-1]
    in_dim = x.shape[-1]
    B = int(np.prod(prev_shape)) if prev_shape else 1

    km = n_mixtures * out_dim
    nm = n_mixtures
    Np = _round_up(km + 2 * nm, 128)
    K_pad = in_dim if in_dim <= tk else _round_up(in_dim, tk)
    assert w_fused.shape == (K_pad, Np), (w_fused.shape, (K_pad, Np))
    assert b_fused.shape == (1, Np), (b_fused.shape, (1, Np))

    tk_eff = in_dim if in_dim <= tk else tk
    n_k = K_pad // tk_eff

    # Batch tile: large by default, clamped to the dtype's sublane multiple.
    sub = _min_sublanes(x.dtype)
    tb = _round_up(max(sub, min(int(tb), _round_up(B, sub))), sub)
    B_pad = _round_up(B, tb)

    xf = x.reshape(B, in_dim)
    if B_pad != B or K_pad != in_dim:
        xf = jnp.pad(xf, ((0, B_pad - B), (0, K_pad - in_dim)))

    grid = (B_pad // tb, n_k)
    kernel = functools.partial(_mdn_kernel, km=km, nm=nm)

    # VMEM working set: double-buffered x / w / b / out tiles + f32 accumulator.
    x_item = jnp.dtype(x.dtype).itemsize
    w_item = jnp.dtype(w_fused.dtype).itemsize
    est = (2 * (tb * tk_eff * x_item + tk_eff * Np * w_item + Np * w_item
                + tb * Np * x_item) + tb * Np * 4)
    vmem_limit = None
    if est > 24 * 1024 * 1024:
        vmem_limit = int(min(est * 5 // 4 + (4 << 20), 100 * 1024 * 1024))

    packed = pl.pallas_call(
        kernel,
        out_shape=jax.ShapeDtypeStruct((B_pad, Np), x.dtype),
        grid_spec=pltpu.PrefetchScalarGridSpec(
            num_scalar_prefetch=0,
            grid=grid,
            in_specs=[
                pl.BlockSpec((tb, tk_eff), lambda i, k: (i, k)),   # x tile
                pl.BlockSpec((tk_eff, Np), lambda i, k: (k, 0)),   # fused weight
                pl.BlockSpec((1, Np), lambda i, k: (0, 0)),        # fused bias
            ],
            out_specs=pl.BlockSpec((tb, Np), lambda i, k: (i, 0)), # packed out
            scratch_shapes=[pltpu.VMEM((tb, Np), jnp.float32)],
        ),
        compiler_params=pltpu.CompilerParams(
            dimension_semantics=("parallel", "arbitrary"),
            vmem_limit_bytes=vmem_limit),
    )(xf, w_fused, b_fused)

    # TODO(synk): downstream MDN-loss consumers should read the packed padded
    # buffer directly (or fuse these slices) to avoid a second pass over the
    # outputs; kept here to match the module's return signature.
    mean = packed[:B, :km].reshape(prev_shape + (n_mixtures, out_dim))
    alpha = packed[:B, km:km + nm].reshape(prev_shape + (n_mixtures,))
    sigma_inv = packed[:B, km + nm:km + 2 * nm].reshape(prev_shape + (n_mixtures,))
    return mean, sigma_inv, alpha


def init_params(key, in_dim, out_dim, n_mixtures, dtype=jnp.float32):
    """Deterministic init mimicking nn.Linear's uniform(-1/sqrt(in), 1/sqrt(in))."""
    bound = 1.0 / np.sqrt(in_dim)
    ks = jax.random.split(key, 6)
    u = lambda k, shape: jax.random.uniform(k, shape, dtype=dtype,
                                            minval=-bound, maxval=bound)
    w_mean = u(ks[0], (in_dim, out_dim * n_mixtures))
    b_mean = u(ks[1], (1, out_dim * n_mixtures))
    w_alpha = u(ks[2], (in_dim, n_mixtures))
    b_alpha = u(ks[3], (1, n_mixtures))
    w_sigma = u(ks[4], (in_dim, n_mixtures))
    b_sigma = u(ks[5], (1, n_mixtures))
    return (w_mean, b_mean, w_alpha, b_alpha, w_sigma, b_sigma)


def _reference(x, params, n_mixtures, out_dim):
    w_mean, b_mean, w_alpha, b_alpha, w_sigma, b_sigma = params
    prev_shape = x.shape[:-1]
    mean = (x @ w_mean + b_mean[0]).reshape(prev_shape + (n_mixtures, out_dim))
    sigma_inv = jnp.exp(x @ w_sigma + b_sigma[0])
    alpha = jax.nn.softmax(x @ w_alpha + b_alpha[0], axis=-1)
    return mean, sigma_inv, alpha


def _check(x, params, n_mixtures, out_dim, tb=1024, tk=512):
    w_fused, b_fused = fuse_mdn_params(params, n_mixtures=n_mixtures,
                                       out_dim=out_dim, tk=tk)
    mean, sigma_inv, alpha = mixture_density_top(
        x, w_fused, b_fused, n_mixtures=n_mixtures, out_dim=out_dim,
        tb=tb, tk=tk)
    jax.block_until_ready((mean, sigma_inv, alpha))
    mean_r, sigma_r, alpha_r = _reference(x, params, n_mixtures, out_dim)
    assert mean.shape == x.shape[:-1] + (n_mixtures, out_dim)
    assert sigma_inv.shape == x.shape[:-1] + (n_mixtures,)
    assert alpha.shape == x.shape[:-1] + (n_mixtures,)
    np.testing.assert_allclose(np.asarray(mean), np.asarray(mean_r),
                               rtol=1e-5, atol=1e-5)
    np.testing.assert_allclose(np.asarray(sigma_inv), np.asarray(sigma_r),
                               rtol=1e-4, atol=1e-5)
    # alpha uses the approximate EUP reciprocal -> looser tolerance.
    np.testing.assert_allclose(np.asarray(alpha), np.asarray(alpha_r),
                               rtol=1e-2, atol=1e-3)


if __name__ == "__main__":
    key = jax.random.PRNGKey(0)
    k_x, k_p, k_x2, k_p3, k_x3 = jax.random.split(key, 5)

    out_dim, n_mixtures = 4, 3

    # Small smoke test (B = 16, in_dim = 32, single K step; tile clamps to 16).
    in_dim = 32
    params = init_params(k_p, in_dim, out_dim, n_mixtures)
    x = jax.random.normal(k_x, (2, 8, in_dim), dtype=jnp.float32)
    _check(x, params, n_mixtures, out_dim)

    # Ragged batch (B = 15) exercises the pad-to-tile path.
    x2 = jax.random.normal(k_x2, (3, 5, in_dim), dtype=jnp.float32)
    _check(x2, params, n_mixtures, out_dim)

    # in_dim = 256 with tk = 128 exercises the K-tiled accumulator path.
    in_dim3 = 256
    params3 = init_params(k_p3, in_dim3, out_dim, n_mixtures)
    x3 = jax.random.normal(k_x3, (2, 8, in_dim3), dtype=jnp.float32)
    _check(x3, params3, n_mixtures, out_dim, tk=128)

    print("KERNEL_OK")
</pallas_src>

<mosaic_0001>
module attributes {stable_mosaic.version = 11 : i64} {
  func.func @_mdn_kernel(%arg0: i32, %arg1: i32, %arg2: memref<16x32xf32, #tpu.memory_space<vmem>>, %arg3: memref<32x128xf32, #tpu.memory_space<vmem>>, %arg4: memref<1x128xf32, #tpu.memory_space<vmem>>, %arg5: memref<16x128xf32, #tpu.memory_space<vmem>>, %arg6: memref<16x128xf32, #tpu.memory_space<vmem>>) attributes {dimension_semantics = [#tpu.dimension_semantics<parallel>, #tpu.dimension_semantics<arbitrary>], iteration_bounds = array<i64: 1, 1>, scalar_prefetch = 0 : i64, scratch_operands = 1 : i64, tpu.core_type = #tpu.core_type<tc>, window_params = [{transform_indices = @transform_0, window_bounds = array<i64: 16, 32>}, {transform_indices = @transform_1, window_bounds = array<i64: 32, 128>}, {pipeline_mode = #tpu.pipeline_mode<synchronous>, transform_indices = @transform_2, window_bounds = array<i64: 1, 128>}, {transform_indices = @transform_3, window_bounds = array<i64: 16, 128>}]} {
    %c0_i32 = arith.constant 0 : i32
    %0 = arith.cmpi eq, %arg1, %c0_i32 : i32
    %1 = arith.extui %0 : i1 to i32
    %c0_i32_0 = arith.constant 0 : i32
    %2 = arith.cmpi ne, %1, %c0_i32_0 : i32
    scf.if %2 {
      %cst_10 = arith.constant 0.000000e+00 : f32
      %12 = vector.broadcast %cst_10 : f32 to vector<16x128xf32>
      %c0_11 = arith.constant 0 : index
      %c0_12 = arith.constant 0 : index
      %13 = vector.load %arg6[%c0_11, %c0_12] : memref<16x128xf32, #tpu.memory_space<vmem>>, vector<16x128xf32>
      tpu.vector_store %arg6[%c0_11, %c0_12], %12 {strides = array<i32>} : memref<16x128xf32, #tpu.memory_space<vmem>>, vector<16x128xf32>,
    } else {
    }
    %c0 = arith.constant 0 : index
    %c0_1 = arith.constant 0 : index
    %3 = vector.load %arg6[%c0, %c0_1] : memref<16x128xf32, #tpu.memory_space<vmem>>, vector<16x128xf32>
    %c0_2 = arith.constant 0 : index
    %c0_3 = arith.constant 0 : index
    %4 = vector.load %arg2[%c0_2, %c0_3] : memref<16x32xf32, #tpu.memory_space<vmem>>, vector<16x32xf32>
    %c0_4 = arith.constant 0 : index
    %c0_5 = arith.constant 0 : index
    %5 = vector.load %arg3[%c0_4, %c0_5] : memref<32x128xf32, #tpu.memory_space<vmem>>, vector<32x128xf32>
    %cst = arith.constant dense<0.000000e+00> : vector<16x128xf32>
    %6 = tpu.matmul %4, %5, %cst {dimension_numbers = #tpu.dot_dimension_numbers<[1], [0], [0], [1], [0, 0, 1, 1], [], []>} : vector<16x32xf32>, vector<32x128xf32>, vector<16x128xf32> -> vector<16x128xf32>
    %7 = arith.addf %3, %6 : vector<16x128xf32>
    %c0_6 = arith.constant 0 : index
    %c0_7 = arith.constant 0 : index
    %8 = vector.load %arg6[%c0_6, %c0_7] : memref<16x128xf32, #tpu.memory_space<vmem>>, vector<16x128xf32>
    tpu.vector_store %arg6[%c0_6, %c0_7], %7 {strides = array<i32>} : memref<16x128xf32, #tpu.memory_space<vmem>>, vector<16x128xf32>,
    %c0_i32_8 = arith.constant 0 : i32
    %9 = arith.cmpi eq, %arg1, %c0_i32_8 : i32
    %10 = arith.extui %9 : i1 to i32
    %c0_i32_9 = arith.constant 0 : i32
    %11 = arith.cmpi ne, %10, %c0_i32_9 : i32
    scf.if %11 {
      %c0_10 = arith.constant 0 : index
      %c0_11 = arith.constant 0 : index
      %12 = vector.load %arg6[%c0_10, %c0_11] : memref<16x128xf32, #tpu.memory_space<vmem>>, vector<16x128xf32>
      %c0_12 = arith.constant 0 : index
      %c0_13 = arith.constant 0 : index
      %13 = vector.load %arg4[%c0_12, %c0_13] : memref<1x128xf32, #tpu.memory_space<vmem>>, vector<1x128xf32>
      %14 = vector.broadcast %13 : vector<1x128xf32> to vector<16x128xf32>
      %15 = arith.addf %12, %14 : vector<16x128xf32>
      %16 = tpu.iota {dimensions = array<i32: 1>} : vector<16x128xi32>
      %c12_i32 = arith.constant 12 : i32
      %17 = vector.broadcast %c12_i32 : i32 to vector<16x128xi32>
      %18 = arith.cmpi slt, %16, %17 : vector<16x128xi32>
      %c12_i32_14 = arith.constant 12 : i32
      %19 = vector.broadcast %c12_i32_14 : i32 to vector<16x128xi32>
      %20 = arith.cmpi sge, %16, %19 : vector<16x128xi32>
      %c15_i32 = arith.constant 15 : i32
      %21 = vector.broadcast %c15_i32 : i32 to vector<16x128xi32>
      %22 = arith.cmpi slt, %16, %21 : vector<16x128xi32>
      %23 = arith.andi %20, %22 : vector<16x128xi1>
      %cst_15 = arith.constant -1.000000e+30 : f32
      %24 = vector.broadcast %cst_15 : f32 to vector<16x128xf32>
      %25 = arith.select %23, %15, %24 : vector<16x128xi1>, vector<16x128xf32>
      %cst_16 = arith.constant dense<0xFF800000> : vector<16xf32>
      %26 = vector.multi_reduction <maximumf>, %25, %cst_16 [1] : vector<16x128xf32> to vector<16xf32>
      %27 = vector.shape_cast %26 : vector<16xf32> to vector<16x1xf32>
      %28 = vector.broadcast %27 : vector<16x1xf32> to vector<16x128xf32>
      %29 = arith.subf %25, %28 : vector<16x128xf32>
      %30 = math.exp %29 : vector<16x128xf32>
      %cst_17 = arith.constant dense<0.000000e+00> : vector<16xf32>
      %31 = vector.multi_reduction <add>, %30, %cst_17 [1] : vector<16x128xf32> to vector<16xf32>
      %32 = vector.shape_cast %31 : vector<16xf32> to vector<16x1xf32>
      %33 = tpu.reciprocal %32 {approx = true} : vector<16x1xf32> -> vector<16x1xf32>
      %34 = vector.broadcast %33 : vector<16x1xf32> to vector<16x128xf32>
      %35 = arith.mulf %30, %34 : vector<16x128xf32>
      %36 = math.exp %15 : vector<16x128xf32>
      %37 = arith.select %23, %35, %36 : vector<16x128xi1>, vector<16x128xf32>
      %38 = arith.select %18, %15, %37 : vector<16x128xi1>, vector<16x128xf32>
      %c0_18 = arith.constant 0 : index
      %c0_19 = arith.constant 0 : index
      %39 = vector.load %arg5[%c0_18, %c0_19] : memref<16x128xf32, #tpu.memory_space<vmem>>, vector<16x128xf32>
      tpu.vector_store %arg5[%c0_18, %c0_19], %38 {strides = array<i32>} : memref<16x128xf32, #tpu.memory_space<vmem>>, vector<16x128xf32>,
    } else {
    }
    return
  }
  func.func @transform_0(%arg0: i32, %arg1: i32) -> (i32, i32) {
    %c0_i32 = arith.constant 0 : i32
    return %arg0, %arg1 : i32, i32
  }
  func.func @transform_1(%arg0: i32, %arg1: i32) -> (i32, i32) {
    %c0_i32 = arith.constant 0 : i32
    %c0_i32_0 = arith.constant 0 : i32
    return %arg1, %c0_i32 : i32, i32
  }
  func.func @transform_2(%arg0: i32, %arg1: i32) -> (i32, i32) {
    %c0_i32 = arith.constant 0 : i32
    %c0_i32_0 = arith.constant 0 : i32
    %c0_i32_1 = arith.constant 0 : i32
    return %c0_i32, %c0_i32_0 : i32, i32
  }
  func.func @transform_3(%arg0: i32, %arg1: i32) -> (i32, i32) {
    %c0_i32 = arith.constant 0 : i32
    %c0_i32_0 = arith.constant 0 : i32
    return %arg0, %c0_i32 : i32, i32
  }
}

</mosaic_0001>

<bundles_post_ra>
// kernel: tpu_custom_call.1
= control target key start
LH: loop header
LB: loop body
LE: loop exit
PB: predicated region body
PF: predicated region fallthrough
CT: control target
= control target key end

     0   :  { %8 = vsyncpa [#allocation4], 0  ;;  %s413_s0 = inlined_call_operand.hbm [shape: f32[16,32], index: 0, kind: input, shape index: {}]   ;;  %s414_s1 = inlined_call_operand.hbm [shape: f32[32,128], index: 1, kind: input, shape index: {}]   ;;  %s415_s2 = inlined_call_operand.vmem [shape: f32[1,128], index: 2, kind: input, shape index: {}]   ;;  %s416_s3 = inlined_call_operand.hbm [shape: f32[16,128], index: 3, kind: output, shape index: {}]  }
   0x1   :  { %9 = vsyncpa [#allocation7], 0 }
   0x2   :  { %10 = vsyncpa [#allocation5], 0  ;;  %s328_s12 = smov [#allocation3]   ;;  %s256_s16 = scalar_lea.hbm %s413_s0, 256 }
   0x3   :  { %s16_s13 = sshll.u32 %s328_s12, 4  ;;  %p257_p0 = scmp.ne.s32.totalorder %s413_s0, %s256_s16  ;;  %s17_s13 = int_to_ptr.vmem [resolvable:$true] %s16_s13 }
   0x4   :  { %p260_p1 = scmp.lt.u32.totalorder %s256_s16, %s413_s0 }
   0x6   :  { %p262_p2 = pnand %p260_p1, %p257_p0 }
   0x8   :  { %265 = shalt.err (!%p262_p2)
}
   0x9   :  { %s266_s21 = scalar_lea.vmem %s17_s13, 256  ;;  %p271_p4 = scmp.lt.s32.totalorder %s17_s13, %s17_s13 }
   0xa   :  { %p267_p3 = scmp.ne.s32.totalorder %s17_s13, %s266_s21  ;;  %p272_p5 = scmp.lt.s32.totalorder %s266_s21, %s266_s21 }
   0xc   :  { %p273_p6 = por %p272_p5, %p271_p4 }
   0xe   :  { %p274_p7 = pnand %p273_p6, %p267_p3 }
  0x10   :  { %277 = shalt.err (!%p274_p7)
}
  0x11   :  { %s329_s22 = smov 128   ;;  %s330_s23 = smov 8  }
  0x12   :  { %22 = dma.hbm_to_vmem [thread:$0]  %s413_s0, 256, %s17_s13, [#allocation4], %s329_s22, %s329_s22, %s330_s23  }
  0x13   :  { %s331_s26 = smov [#allocation6]   ;;  %s278_s30 = scalar_lea.hbm %s414_s1, 512 }
  0x14   :  { %s28_s27 = sshll.u32 %s331_s26, 4  ;;  %p279_p8 = scmp.ne.s32.totalorder %s414_s1, %s278_s30  ;;  %s29_s27 = int_to_ptr.vmem [resolvable:$true] %s28_s27 }
  0x15   :  { %p282_p9 = scmp.lt.u32.totalorder %s278_s30, %s414_s1 }
  0x17   :  { %p284_p10 = pnand %p282_p9, %p279_p8 }
  0x19   :  { %287 = shalt.err (!%p284_p10)
}
  0x1a   :  { %s288_s8 = scalar_lea.vmem %s29_s27, 512  ;;  %p293_p12 = scmp.lt.s32.totalorder %s29_s27, %s29_s27 }
  0x1b   :  { %p289_p11 = scmp.ne.s32.totalorder %s29_s27, %s288_s8  ;;  %p294_p13 = scmp.lt.s32.totalorder %s288_s8, %s288_s8 }
  0x1d   :  { %p295_p0 = por %p294_p13, %p293_p12 }
  0x1f   :  { %p296_p1 = pnand %p295_p0, %p289_p11 }
  0x21   :  { %299 = shalt.err (!%p296_p1)
}
  0x22   :  { %34 = dma.hbm_to_vmem [thread:$0]  %s414_s1, 512, %s29_s27, [#allocation7], %s329_s22, %s329_s22, %s330_s23  }
  0x23   :  { %322 = dma.done.wait [#allocation4], 256  }
  0x24   :  { %323 = vsyncadd [#allocation4], 4294967040 }
  0x25   :  { %324 = dma.done.wait [#allocation7], 512  }
  0x26   :  { %325 = vsyncadd [#allocation7], 4294966784  ;;  %vm57_vm0 = vcmask 261120   ;;  %v53_v0 = vld [vmem:[#allocation6] sm:$0xff]  ;;  %v54_v1 = vld [vmem:[#allocation6 + $0x8] sm:$0xff]  ;;  %v157_v8 = vlaneseq }
  0x27   :  { %v55_v2 = vld [vmem:[#allocation6 + $0x10] sm:$0xff]  ;;  %v231_v3 = vpack.c.bf16 %v54_v1, %v53_v0  ;;  %v56_v4 = vld [vmem:[#allocation6 + $0x18] sm:$0xff] }
  0x28   :  { %v51_v5 = vld [vmem:[#allocation3] sm:$0xff]  ;;  %v235_v6 = vpack.c.bf16 %v56_v4, %v55_v2  ;;  %v52_v7 = vld [vmem:[#allocation3 + $0x8] sm:$0xff]  ;;  %v158_v9 = vand.u32 127, %v157_v8 }
  0x29   :  { %228 = vmatprep.mubr.msk.f32.mxu0 %vm57_vm0, %v51_v5  ;;  %232 = vmatprep.subr.bf16.mxu0 %v231_v3  ;;  %v213_v10 = vld [vmem:[%s415_s2] ss:$0 sm:$0xff]  ;;  %s332_s2 = smov [#allocation8]  }
  0x2a   :  { %234 = vmatpush3.bf16.msra.mxu0 %v231_v3  ;;  %vm160_vm1 = vcmp.ge.s32.totalorder %v158_v9, 12  ;;  %vm161_vm2 = vcmp.lt.s32.totalorder %v158_v9, 15  ;;  %vm159_vm4 = vcmp.lt.s32.totalorder %v158_v9, 12  ;;  %s198_s11 = sshll.u32 %s332_s2, 4  ;;  %s199_s11 = int_to_ptr.vmem [resolvable:$true] %s198_s11 }
  0x2b   :  { %236 = vmatprep.subr.bf16.mxu0 %v235_v6  ;;  %vm386_vm3 = vmand %vm160_vm1, %vm161_vm2  ;;  %s300_s12 = scalar_lea.vmem %s199_s11, 256  ;;  %p305_p3 = scmp.lt.s32.totalorder %s199_s11, %s199_s11 }
  0x2c   :  { %p301_p2 = scmp.ne.s32.totalorder %s199_s11, %s300_s12  ;;  %p306_p4 = scmp.lt.s32.totalorder %s300_s12, %s300_s12 }
  0x2e   :  { %238 = vmatpush3.bf16.msra.mxu0 %v235_v6  ;;  %p307_p5 = por %p306_p4, %p305_p3 }
  0x30   :  { %p308_p6 = pnand %p307_p5, %p301_p2 }
  0x31   :  { %229 = vmatmul.mubr.msk.f32.vlgmr.msra.gmra.mrb[0].mxu0 %vm57_vm0, %v52_v7 }
 0x104   :  { %v230_v11 = vpop.f32.mrb[0].mxu0 }
 0x105   :  { %v130_v12 = vpop.f32.mrb[1].mxu0  ;;  %v156_v15 = vadd.f32 %v230_v11, %v213_v10 }
 0x106   :  { %v155_v14 = vadd.f32 %v213_v10, %v130_v12 }
 0x107   :  { %v164_v17 = vsel %vm386_vm3, %v156_v15, -1e+30  ;;  %v185_v28 = vmul.f32 1.442695, %v156_v15 }
 0x108   :  { %v163_v16 = vsel %vm386_vm3, %v155_v14, -1e+30  ;;  %v183_v26 = vmul.f32 1.442695, %v155_v14 }
 0x109   :  { %165 = vmax.xlane.f32.xlu0 %v163_v16 }
 0x10d   :  { %167 = vmax.xlane.f32.xlu0 %v164_v17 }
 0x196   :  { %v166_v18 = vpop.xlane.xlu0 %165 }
 0x197   :  { %v169_v19 = vsub.f32 %v163_v16, %v166_v18 }
 0x199   :  { %v171_v20 = vmul.f32 1.442695, %v169_v19 }
 0x19a   :  { %v168_v21 = vpop.xlane.xlu0 %167 }
 0x19b   :  { %244 = vpow2.f32 %v171_v20  ;;  %v170_v22 = vsub.f32 %v164_v17, %v168_v21 }
 0x19d   :  { %v173_v23 = vmul.f32 1.442695, %v170_v22 }
 0x19f   :  { %246 = vpow2.f32 %v173_v23 }
 0x1a5   :  { %v245_v24 = vpop.eup %244 }
 0x1a6   :  { %175 = vadd.xlane.f32.xlu1 %v245_v24 }
 0x1a9   :  { %v247_v25 = vpop.eup %246 }
 0x1aa   :  { %177 = vadd.xlane.f32.xlu1 %v247_v25 }
 0x233   :  { %v176_v27 = vpop.xlane.xlu1 %175 }
 0x234   :  { %248 = vrcp.f32 %v176_v27 }
 0x235   :  { %250 = vpow2.f32 %v183_v26 }
 0x237   :  { %v178_v29 = vpop.xlane.xlu1 %177 }
 0x238   :  { %252 = vrcp.f32 %v178_v29 }
 0x239   :  { %254 = vpow2.f32 %v185_v28 }
 0x23e   :  { %v249_v30 = vpop.eup %248 }
 0x23f   :  { %v181_v31 = vmul.f32 %v249_v30, %v245_v24  ;;  %v251_v32 = vpop.eup %250 }
 0x241   :  { %v187_v33 = vsel %vm386_vm3, %v181_v31, %v251_v32 }
 0x242   :  { %v253_v34 = vpop.eup %252  ;;  %v189_v35 = vsel %vm159_vm4, %v155_v14, %v187_v33 }
 0x243   :  { %v182_v36 = vmul.f32 %v253_v34, %v247_v25  ;;  %191 = vst [vmem:[#allocation8] sm:$0xff] %v189_v35  ;;  %v255_v37 = vpop.eup %254 }
 0x245   :  { %v188_v38 = vsel %vm386_vm3, %v182_v36, %v255_v37 }
 0x246   :  { %v190_v39 = vsel %vm159_vm4, %v156_v15, %v188_v38 }
 0x247   :  { %192 = vst [vmem:[#allocation8 + $0x8] sm:$0xff] %v190_v39 }
 0x248   :  { %311 = shalt.err (!%p308_p6)
}
 0x249   :  { %s312_s15 = scalar_lea.hbm %s416_s3, 256 }
 0x24a   :  { %p313_p7 = scmp.ne.s32.totalorder %s416_s3, %s312_s15  ;;  %p316_p8 = scmp.lt.u32.totalorder %s312_s15, %s416_s3 }
 0x24c   :  { %p318_p9 = pnand %p316_p8, %p313_p7 }
 0x24e   :  { %321 = shalt.err (!%p318_p9)
}
 0x24f   :  { %204 = dma.vmem_to_hbm [thread:$0]  %s199_s11, 256, %s416_s3, [#allocation5], %s329_s22, %s329_s22, %s330_s23  }
 0x250   :  { %326 = dma.done.wait [#allocation5], 256  }
 0x251   :  { %327 = vsyncadd [#allocation5], 4294967040 }
 0x252   :  { %208 = vsyncpa [#allocation4], 1 }
 0x253   :  { %209 = vsyncpa [#allocation7], 1 }
 0x254   :  { %210 = vsyncpa [#allocation5], 1 }

</bundles_post_ra>
